<compile_context>
chip_gen: v7x
topology: tpu7x:2x2x1
jax: 0.10.0
libtpu: 0.0.40
codegen_flags: <defaults>
</compile_context>

<pallas_src>
import functools
import math

import jax
import jax.numpy as jnp
from jax.experimental import pallas as pl
from jax.experimental.pallas import tpu as pltpu

BN_EPS = 1e-5
BN_SCALE = 1.0 / math.sqrt(1.0 + BN_EPS)   # eval-mode BatchNorm: y = x * BN_SCALE


# ---------------------------------------------------------------------------
# Pallas kernel: fused 1x1 convs + BN + sigmoid + attention blend
# ---------------------------------------------------------------------------
def _signe_kernel(ls1_ref, ls2_ref, spec_ref,
                  w1_ref, w2_ref, wm_ref,
                  b1_ref, b2_ref, bm_ref,
                  out_ref):
    L1 = ls1_ref[0]                      # (C, T)   lane-dense spatial tile
    L2 = ls2_ref[0]
    SP = spec_ref[0]

    # 1x1 convs are plain matmuls over the channel dim (K = C).
    i1 = (jnp.dot(w1_ref[...], L1, preferred_element_type=jnp.float32)
          + b1_ref[...]) * BN_SCALE      # (C, T)
    i2 = (jnp.dot(w2_ref[...], L2, preferred_element_type=jnp.float32)
          + b2_ref[...]) * BN_SCALE
    x = i1 - i2

    # 1-output-channel conv as a sublane reduction (avoids padding 1 -> 128
    # MXU output columns).
    logits = (jnp.sum(x * wm_ref[...], axis=0, keepdims=True)
              + bm_ref[...]) * BN_SCALE  # (1, T)

    # sigmoid = 1 / (1 + exp(-x)); exp and approx-reciprocal both run on the
    # EUP slot (free relative to the VPU-bound blend below).
    m = pl.reciprocal(1.0 + jnp.exp(-logits), approx=True)

    out_ref[0] = L1 * m + SP * (1.0 - m)


def _pick_hw_tile(hw, c):
    """Largest multiple-of-128 divisor of hw fitting a ~8 MiB VMEM budget."""
    # 4 feature-map blocks (ls1, ls2, spec, out), double-buffered, f32.
    budget_elems = (8 * 1024 * 1024) // (4 * 2 * 4 * max(c, 1))
    if hw <= 128 or hw % 128 != 0 or hw <= budget_elems:
        return hw                         # full spatial extent (always legal)
    best = 128
    t = 256
    while t <= budget_elems:
        if hw % t == 0:
            best = t
        t += 128
    return best


# ---------------------------------------------------------------------------
# Whole forward, jitted (reshapes + weight reshapes + pallas_call)
# ---------------------------------------------------------------------------
@jax.jit
def significance_extraction(params, ls1, ls2, spec):
    N, C, H, W = ls1.shape
    HW = H * W
    thw = _pick_hw_tile(HW, C)
    grid = (N, HW // thw)

    ls1_f = ls1.reshape(N, C, HW)        # contiguous view of NCHW, no copy
    ls2_f = ls2.reshape(N, C, HW)
    spec_f = spec.reshape(N, C, HW)

    w1 = params["w1"]                    # (C, C)
    w2 = params["w2"]                    # (C, C)
    wm = params["wm"].reshape(C, 1)      # (C, 1)   1-channel conv weight
    b1 = params["b1"].reshape(C, 1)
    b2 = params["b2"].reshape(C, 1)
    bm = params["bm"].reshape(1, 1)

    fmap_spec = pl.BlockSpec((1, C, thw), lambda n, t: (n, 0, t))

    def const_spec(shape):
        return pl.BlockSpec(shape, lambda n, t: (0, 0))

    out = pl.pallas_call(
        _signe_kernel,
        out_shape=jax.ShapeDtypeStruct((N, C, HW), jnp.float32),
        grid=grid,
        in_specs=[
            fmap_spec, fmap_spec, fmap_spec,
            const_spec((C, C)), const_spec((C, C)), const_spec((C, 1)),
            const_spec((C, 1)), const_spec((C, 1)), const_spec((1, 1)),
        ],
        out_specs=fmap_spec,
        compiler_params=pltpu.CompilerParams(
            dimension_semantics=("parallel", "parallel")),
    )(ls1_f, ls2_f, spec_f, w1, w2, wm, b1, b2, bm)

    return out.reshape(N, C, H, W)


# ---------------------------------------------------------------------------
# Plain-JAX reference (eval-mode semantics of the PyTorch module)
# ---------------------------------------------------------------------------
def significance_extraction_ref(params, ls1, ls2, spec):
    def conv1x1_bn(x, w, b):
        y = jnp.einsum("nchw,oc->nohw", x, w) + b[None, :, None, None]
        return y * BN_SCALE
    i1 = conv1x1_bn(ls1, params["w1"], params["b1"])
    i2 = conv1x1_bn(ls2, params["w2"], params["b2"])
    m = jax.nn.sigmoid(conv1x1_bn(i1 - i2, params["wm"], params["bm"]))
    return ls1 * m + spec * (1.0 - m)


# ---------------------------------------------------------------------------
# Deterministic parameter construction (PyTorch Conv2d(k=1) layouts, squeezed)
# ---------------------------------------------------------------------------
def make_params(key, c, scale=0.05):
    ks = jax.random.split(key, 6)
    return dict(
        w1=scale * jax.random.normal(ks[0], (c, c), jnp.float32),
        b1=scale * jax.random.normal(ks[1], (c,), jnp.float32),
        w2=scale * jax.random.normal(ks[2], (c, c), jnp.float32),
        b2=scale * jax.random.normal(ks[3], (c,), jnp.float32),
        wm=scale * jax.random.normal(ks[4], (1, c), jnp.float32),
        bm=scale * jax.random.normal(ks[5], (1,), jnp.float32),
    )


if __name__ == "__main__":
    key = jax.random.PRNGKey(0)
    kp, k1, k2, k3 = jax.random.split(key, 4)

    B, C, H, W = 2, 16, 16, 16           # in_channels=16, 16x16 feature maps
    params = make_params(kp, C)

    ls1 = jax.random.normal(k1, (B, C, H, W), jnp.float32)   # inputs[0]
    ls2 = jax.random.normal(k2, (B, C, H, W), jnp.float32)   # inputs[1]
    spec = jax.random.normal(k3, (B, C, H, W), jnp.float32)  # inputs[2]

    out = significance_extraction(params, ls1, ls2, spec)
    out = jax.block_until_ready(out)

    ref = jax.jit(significance_extraction_ref)(params, ls1, ls2, spec)
    ref = jax.block_until_ready(ref)

    assert out.shape == (B, C, H, W), out.shape
    assert bool(jnp.all(jnp.isfinite(out)))
    assert bool(jnp.allclose(out, ref, atol=1e-2, rtol=1e-2)), \
        float(jnp.max(jnp.abs(out - ref)))
    print("KERNEL_OK")
</pallas_src>

<mosaic_0001>
module attributes {stable_mosaic.version = 11 : i64} {
  func.func @_signe_kernel(%arg0: i32, %arg1: i32, %arg2: memref<1x16x256xf32, #tpu.memory_space<vmem>>, %arg3: memref<1x16x256xf32, #tpu.memory_space<vmem>>, %arg4: memref<1x16x256xf32, #tpu.memory_space<vmem>>, %arg5: memref<16x16xf32, #tpu.memory_space<vmem>>, %arg6: memref<16x16xf32, #tpu.memory_space<vmem>>, %arg7: memref<16x1xf32, #tpu.memory_space<vmem>>, %arg8: memref<16x1xf32, #tpu.memory_space<vmem>>, %arg9: memref<16x1xf32, #tpu.memory_space<vmem>>, %arg10: memref<1x1xf32, #tpu.memory_space<vmem>>, %arg11: memref<1x16x256xf32, #tpu.memory_space<vmem>>) attributes {dimension_semantics = [#tpu.dimension_semantics<parallel>, #tpu.dimension_semantics<parallel>], iteration_bounds = array<i64: 2, 1>, scalar_prefetch = 0 : i64, scratch_operands = 0 : i64, tpu.core_type = #tpu.core_type<tc>, window_params = [{transform_indices = @transform_0, window_bounds = array<i64: 1, 16, 256>}, {transform_indices = @transform_1, window_bounds = array<i64: 1, 16, 256>}, {transform_indices = @transform_2, window_bounds = array<i64: 1, 16, 256>}, {pipeline_mode = #tpu.pipeline_mode<synchronous>, transform_indices = @transform_3, window_bounds = array<i64: 16, 16>}, {pipeline_mode = #tpu.pipeline_mode<synchronous>, transform_indices = @transform_4, window_bounds = array<i64: 16, 16>}, {pipeline_mode = #tpu.pipeline_mode<synchronous>, transform_indices = @transform_5, window_bounds = array<i64: 16, 1>}, {pipeline_mode = #tpu.pipeline_mode<synchronous>, transform_indices = @transform_6, window_bounds = array<i64: 16, 1>}, {pipeline_mode = #tpu.pipeline_mode<synchronous>, transform_indices = @transform_7, window_bounds = array<i64: 16, 1>}, {pipeline_mode = #tpu.pipeline_mode<synchronous>, transform_indices = @transform_8, window_bounds = array<i64: 1, 1>}, {transform_indices = @transform_9, window_bounds = array<i64: 1, 16, 256>}]} {
    %c0 = arith.constant 0 : index
    %c0_0 = arith.constant 0 : index
    %c0_1 = arith.constant 0 : index
    %0 = vector.load %arg2[%c0, %c0_0, %c0_1] : memref<1x16x256xf32, #tpu.memory_space<vmem>>, vector<1x16x256xf32>
    %1 = vector.shape_cast %0 : vector<1x16x256xf32> to vector<16x256xf32>
    %c0_2 = arith.constant 0 : index
    %c0_3 = arith.constant 0 : index
    %c0_4 = arith.constant 0 : index
    %2 = vector.load %arg3[%c0_2, %c0_3, %c0_4] : memref<1x16x256xf32, #tpu.memory_space<vmem>>, vector<1x16x256xf32>
    %3 = vector.shape_cast %2 : vector<1x16x256xf32> to vector<16x256xf32>
    %c0_5 = arith.constant 0 : index
    %c0_6 = arith.constant 0 : index
    %c0_7 = arith.constant 0 : index
    %4 = vector.load %arg4[%c0_5, %c0_6, %c0_7] : memref<1x16x256xf32, #tpu.memory_space<vmem>>, vector<1x16x256xf32>
    %5 = vector.shape_cast %4 : vector<1x16x256xf32> to vector<16x256xf32>
    %c0_8 = arith.constant 0 : index
    %c0_9 = arith.constant 0 : index
    %6 = vector.load %arg5[%c0_8, %c0_9] : memref<16x16xf32, #tpu.memory_space<vmem>>, vector<16x16xf32>
    %cst = arith.constant dense<0.000000e+00> : vector<16x256xf32>
    %7 = tpu.matmul %6, %1, %cst {dimension_numbers = #tpu.dot_dimension_numbers<[1], [0], [0], [1], [0, 0, 1, 1], [], []>} : vector<16x16xf32>, vector<16x256xf32>, vector<16x256xf32> -> vector<16x256xf32>
    %c0_10 = arith.constant 0 : index
    %c0_11 = arith.constant 0 : index
    %8 = vector.load %arg8[%c0_10, %c0_11] : memref<16x1xf32, #tpu.memory_space<vmem>>, vector<16x1xf32>
    %9 = vector.broadcast %8 : vector<16x1xf32> to vector<16x256xf32>
    %10 = arith.addf %7, %9 : vector<16x256xf32>
    %cst_12 = arith.constant 0.999994993 : f32
    %11 = vector.broadcast %cst_12 : f32 to vector<16x256xf32>
    %12 = arith.mulf %10, %11 : vector<16x256xf32>
    %c0_13 = arith.constant 0 : index
    %c0_14 = arith.constant 0 : index
    %13 = vector.load %arg6[%c0_13, %c0_14] : memref<16x16xf32, #tpu.memory_space<vmem>>, vector<16x16xf32>
    %cst_15 = arith.constant dense<0.000000e+00> : vector<16x256xf32>
    %14 = tpu.matmul %13, %3, %cst_15 {dimension_numbers = #tpu.dot_dimension_numbers<[1], [0], [0], [1], [0, 0, 1, 1], [], []>} : vector<16x16xf32>, vector<16x256xf32>, vector<16x256xf32> -> vector<16x256xf32>
    %c0_16 = arith.constant 0 : index
    %c0_17 = arith.constant 0 : index
    %15 = vector.load %arg9[%c0_16, %c0_17] : memref<16x1xf32, #tpu.memory_space<vmem>>, vector<16x1xf32>
    %16 = vector.broadcast %15 : vector<16x1xf32> to vector<16x256xf32>
    %17 = arith.addf %14, %16 : vector<16x256xf32>
    %cst_18 = arith.constant 0.999994993 : f32
    %18 = vector.broadcast %cst_18 : f32 to vector<16x256xf32>
    %19 = arith.mulf %17, %18 : vector<16x256xf32>
    %20 = arith.subf %12, %19 : vector<16x256xf32>
    %c0_19 = arith.constant 0 : index
    %c0_20 = arith.constant 0 : index
    %21 = vector.load %arg7[%c0_19, %c0_20] : memref<16x1xf32, #tpu.memory_space<vmem>>, vector<16x1xf32>
    %22 = vector.broadcast %21 : vector<16x1xf32> to vector<16x256xf32>
    %23 = arith.mulf %20, %22 : vector<16x256xf32>
    %cst_21 = arith.constant dense<0.000000e+00> : vector<256xf32>
    %24 = vector.multi_reduction <add>, %23, %cst_21 [0] : vector<16x256xf32> to vector<256xf32>
    %25 = vector.shape_cast %24 : vector<256xf32> to vector<1x256xf32>
    %c0_22 = arith.constant 0 : index
    %c0_23 = arith.constant 0 : index
    %26 = vector.load %arg10[%c0_22, %c0_23] : memref<1x1xf32, #tpu.memory_space<vmem>>, vector<1x1xf32>
    %27 = vector.broadcast %26 : vector<1x1xf32> to vector<1x256xf32>
    %28 = arith.addf %25, %27 : vector<1x256xf32>
    %cst_24 = arith.constant 0.999994993 : f32
    %29 = vector.broadcast %cst_24 : f32 to vector<1x256xf32>
    %30 = arith.mulf %28, %29 : vector<1x256xf32>
    %cst_25 = arith.constant 0.000000e+00 : f32
    %31 = vector.broadcast %cst_25 : f32 to vector<1x256xf32>
    %32 = arith.subf %31, %30 : vector<1x256xf32>
    %33 = math.exp %32 : vector<1x256xf32>
    %cst_26 = arith.constant 1.000000e+00 : f32
    %34 = vector.broadcast %cst_26 : f32 to vector<1x256xf32>
    %35 = arith.addf %34, %33 : vector<1x256xf32>
    %36 = tpu.reciprocal %35 {approx = true} : vector<1x256xf32> -> vector<1x256xf32>
    %37 = vector.broadcast %36 : vector<1x256xf32> to vector<16x256xf32>
    %38 = arith.mulf %1, %37 : vector<16x256xf32>
    %cst_27 = arith.constant 1.000000e+00 : f32
    %39 = vector.broadcast %cst_27 : f32 to vector<1x256xf32>
    %40 = arith.subf %39, %36 : vector<1x256xf32>
    %41 = vector.broadcast %40 : vector<1x256xf32> to vector<16x256xf32>
    %42 = arith.mulf %5, %41 : vector<16x256xf32>
    %43 = arith.addf %38, %42 : vector<16x256xf32>
    %c0_28 = arith.constant 0 : index
    %c0_29 = arith.constant 0 : index
    %c0_30 = arith.constant 0 : index
    %44 = vector.load %arg11[%c0_28, %c0_29, %c0_30] : memref<1x16x256xf32, #tpu.memory_space<vmem>>, vector<1x16x256xf32>
    %45 = vector.shape_cast %44 : vector<1x16x256xf32> to vector<16x256xf32>
    %46 = vector.shape_cast %43 : vector<16x256xf32> to vector<1x16x256xf32>
    tpu.vector_store %arg11[%c0_28, %c0_29, %c0_30], %46 {strides = array<i32>} : memref<1x16x256xf32, #tpu.memory_space<vmem>>, vector<1x16x256xf32>,
    return
  }
  func.func @transform_0(%arg0: i32, %arg1: i32) -> (i32, i32, i32) {
    %c0_i32 = arith.constant 0 : i32
    %c0_i32_0 = arith.constant 0 : i32
    return %arg0, %c0_i32, %arg1 : i32, i32, i32
  }
  func.func @transform_1(%arg0: i32, %arg1: i32) -> (i32, i32, i32) {
    %c0_i32 = arith.constant 0 : i32
    %c0_i32_0 = arith.constant 0 : i32
    return %arg0, %c0_i32, %arg1 : i32, i32, i32
  }
  func.func @transform_2(%arg0: i32, %arg1: i32) -> (i32, i32, i32) {
    %c0_i32 = arith.constant 0 : i32
    %c0_i32_0 = arith.constant 0 : i32
    return %arg0, %c0_i32, %arg1 : i32, i32, i32
  }
  func.func @transform_3(%arg0: i32, %arg1: i32) -> (i32, i32) {
    %c0_i32 = arith.constant 0 : i32
    %c0_i32_0 = arith.constant 0 : i32
    %c0_i32_1 = arith.constant 0 : i32
    return %c0_i32, %c0_i32_0 : i32, i32
  }
  func.func @transform_4(%arg0: i32, %arg1: i32) -> (i32, i32) {
    %c0_i32 = arith.constant 0 : i32
    %c0_i32_0 = arith.constant 0 : i32
    %c0_i32_1 = arith.constant 0 : i32
    return %c0_i32, %c0_i32_0 : i32, i32
  }
  func.func @transform_5(%arg0: i32, %arg1: i32) -> (i32, i32) {
    %c0_i32 = arith.constant 0 : i32
    %c0_i32_0 = arith.constant 0 : i32
    %c0_i32_1 = arith.constant 0 : i32
    return %c0_i32, %c0_i32_0 : i32, i32
  }
  func.func @transform_6(%arg0: i32, %arg1: i32) -> (i32, i32) {
    %c0_i32 = arith.constant 0 : i32
    %c0_i32_0 = arith.constant 0 : i32
    %c0_i32_1 = arith.constant 0 : i32
    return %c0_i32, %c0_i32_0 : i32, i32
  }
  func.func @transform_7(%arg0: i32, %arg1: i32) -> (i32, i32) {
    %c0_i32 = arith.constant 0 : i32
    %c0_i32_0 = arith.constant 0 : i32
    %c0_i32_1 = arith.constant 0 : i32
    return %c0_i32, %c0_i32_0 : i32, i32
  }
  func.func @transform_8(%arg0: i32, %arg1: i32) -> (i32, i32) {
    %c0_i32 = arith.constant 0 : i32
    %c0_i32_0 = arith.constant 0 : i32
    %c0_i32_1 = arith.constant 0 : i32
    return %c0_i32, %c0_i32_0 : i32, i32
  }
  func.func @transform_9(%arg0: i32, %arg1: i32) -> (i32, i32, i32) {
    %c0_i32 = arith.constant 0 : i32
    %c0_i32_0 = arith.constant 0 : i32
    return %arg0, %c0_i32, %arg1 : i32, i32, i32
  }
}

</mosaic_0001>

<bundles_post_ra>
// kernel: significance_extraction.1
= control target key start
LH: loop header
LB: loop body
LE: loop exit
PB: predicated region body
PF: predicated region fallthrough
CT: control target
= control target key end

     0   :  { %s1006_s11 = smov 0   ;;  %s1008_s12 = smov 0   ;;  %s1097_s0 = inlined_call_operand.vmem [shape: f32[2,16,256], index: 0, kind: input, shape index: {}]   ;;  %s1098_s1 = inlined_call_operand.vmem [shape: f32[2,16,256], index: 1, kind: input, shape index: {}]   ;;  %s1099_s2 = inlined_call_operand.vmem [shape: f32[2,16,256], index: 2, kind: input, shape index: {}]   ;;  %s1100_s3 = inlined_call_operand.vmem [shape: f32[16,16], index: 3, kind: input, shape index: {}]   ;;  %s1101_s4 = inlined_call_operand.vmem [shape: f32[16,16], index: 4, kind: input, shape index: {}]   ;;  %s1102_s5 = inlined_call_operand.vmem [shape: f32[16,1], index: 5, kind: input, shape index: {}]   ;;  %s1103_s6 = inlined_call_operand.vmem [shape: f32[16,1], index: 6, kind: input, shape index: {}]   ;;  %s1104_s7 = inlined_call_operand.vmem [shape: f32[16,1], index: 7, kind: input, shape index: {}]   ;;  %s1105_s8 = inlined_call_operand.<no memory space> [shape: f32[1,1], index: 8, kind: input, shape index: {}]   ;;  %s1106_s9 = inlined_call_operand.vmem [shape: f32[2,16,256], index: 9, kind: output, shape index: {}]  }
   0x1   :  { %v14_v0 = vstv %s1105_s8  ;;  %s1010_s13 = smov 0  }
   0x2   :  { %15 = vst [vmem:[#allocation2] sm:$0x1] %v14_v0 }
   0x3 LB: > { %s33_s8 = sadd.s32 1, %s945_s12  ;;  %p864_p0 = scmp.ge.s32.totalorder %s949_s13, 1  ;;  %s949_s13 = sphi %s1010_s13, %s21_s13   ;;  %s945_s12 = sphi %s1008_s12, %s1108_s12   ;;  %s941_s11 = sphi %s1006_s11, %s1107_s11  }
   0x4   : > { %p35_p1 = scmp.ge.s32.totalorder %s33_s8, 2  ;;  %p344_p2 = scmp.lt.s32.totalorder %s949_s13, 3 }
   0x6   : > { %s1110_s8 = smov (%p35_p1, %s33_s8), 0  ;;  %p345_p3 = pnand %p864_p0, %p344_p2 }
   0x7   : > { %p407_p4 = scmp.lt.s32.totalorder (!%p345_p3), %s941_s11, 1  ;;  %v951_v1 = vmov (!%p345_p3), 0.0   ;;  %v460_v2 = vld [vmem:[%s1103_s6] sm:$0xff] (!%p345_p3)  ;;  %v952_v4 = vmov (!%p345_p3), 0   ;;  %v461_v5 = vld [vmem:[%s1103_s6 + $0x8] sm:$0xff] (!%p345_p3)  ;;  %vm472_vm0 = vcmask (!%p345_p3), 130048   ;;  %v701_v0 = vlaneseq (!%p345_p3) }
   0x8   : > { %348 = sbr.rel (%p345_p3) target bundleno = 304 (0x130), region = 56  ;;  %543 = vmatprep.mubr.f32.mxu0 (!%p345_p3), %v951_v1  ;;  %644 = vmatprep.mubr.f32.mxu1 (!%p345_p3), %v951_v1  ;;  %v562_v3 = vld [vmem:[%s1104_s7] sm:$0xff] (!%p345_p3)  ;;  %v563_v6 = vld [vmem:[%s1104_s7 + $0x8] sm:$0xff] (!%p345_p3) }
   0x9   : > { %917 = vset.pattern.permute.xlu0 (!%p345_p3), %v952_v4  ;;  %918 = vset.pattern.permute.xlu1 (!%p345_p3), %v952_v4  ;;  %v665_v10 = vld [vmem:[%s1102_s5] sm:$0xff] (!%p345_p3)  ;;  %v666_v20 = vld [vmem:[%s1102_s5 + $0x8] sm:$0xff] (!%p345_p3) }
   0xa   : > { %464 = vperm.xlu0 (!%p345_p3), %917, %v460_v2   ;;  %566 = vperm.xlu1 (!%p345_p3), %918, %v562_v3   ;;  %v458_v21 = vld [vmem:[%s1100_s3] sm:$0xff] (!%p345_p3)  ;;  %v459_v24 = vld [vmem:[%s1100_s3 + $0x8] sm:$0xff] (!%p345_p3) }
   0xb   : > { %v560_v22 = vld [vmem:[%s1101_s4] sm:$0xff] (!%p345_p3)  ;;  %v561_v25 = vld [vmem:[%s1101_s4 + $0x8] sm:$0xff] (!%p345_p3) }
   0xc   : > { %v695_v23 = vld [vmem:[#allocation2] sm:$0x1] (!%p345_p3) }
   0xe   : > { %469 = vperm.xlu0 (!%p345_p3), %917, %v461_v5   ;;  %571 = vperm.xlu1 (!%p345_p3), %918, %v563_v6   ;;  %v702_v5 = vshrl.u32 (!%p345_p3), %v701_v0, 7 }
   0xf   : > { %s1112_s11 = smov (!%p407_p4, %s941_s11), 1 }
  0x10   : > { %s1030_s18 = sshll.u32 %s1112_s11, 5 }
  0x11   : > { %s414_s25 = scalar_lea.vmem %s1097_s0, %s1030_s18  ;;  %s424_s28 = scalar_lea.vmem %s1098_s1, %s1030_s18 }
  0x12   : > { %v1042_v7 = vld [vmem:[%s414_s25 + $0x8] sm:$0xff]  ;;  %v1044_v8 = vld [vmem:[%s414_s25 + $0x18] sm:$0xff]  ;;  %v1055_v13 = vld [vmem:[%s414_s25] sm:$0xff]  ;;  %669 = vperm.xlu0 %917, %v665_v10   ;;  %674 = vperm.xlu1 %918, %v666_v20  }
  0x13   : > { %v883_v9 = vpack.c.bf16 %v1044_v8, %v1042_v7  ;;  %v451_v11 = vld [vmem:[%s424_s28 + $0x8] sm:$0xff]  ;;  %v453_v12 = vld [vmem:[%s424_s28 + $0x18] sm:$0xff]  ;;  %v1057_v15 = vld [vmem:[%s414_s25 + $0x10] sm:$0xff]  ;;  %s434_s25 = scalar_lea.vmem %s1099_s2, %s1030_s18 }
  0x14   : > { %v887_v14 = vpack.c.bf16 %v453_v12, %v451_v11  ;;  %v450_v16 = vld [vmem:[%s424_s28] sm:$0xff]  ;;  %v452_v17 = vld [vmem:[%s424_s28 + $0x10] sm:$0xff]  ;;  %v885_v18 = vpack.c.bf16 %v1057_v15, %v1055_v13  ;;  %v703_v12 = vsub.s32 0, %v702_v5  ;;  %s444_s28 = scalar_lea.vmem %s1106_s9, %s1030_s18 }
  0x15   : > { %884 = vmatprep.subr.bf16.mxu0 %v883_v9  ;;  %v889_v19 = vpack.c.bf16 %v452_v17, %v450_v16 }
  0x16   : > { %888 = vmatprep.subr.bf16.mxu1 %v887_v14  ;;  %886 = vmatpush1.bf16.msra.mxu0 %v885_v18 }
  0x17   : > { %890 = vmatpush1.bf16.msra.mxu1 %v889_v19  ;;  %698 = vperm.xlu0 %917, %v695_v23  }
  0x19   : > { %873 = vmatmul.mubr.msk.f32.vlgmr.msra.gmra.mrb[0].mxu0 %vm472_vm0, %v458_v21 }
  0x1a   : > { %875 = vmatmul.mubr.msk.f32.vlgmr.msra.gmra.mrb[0].mxu1 %vm472_vm0, %v560_v22  ;;  %549 = vmatprep.mubr.f32.mxu0 %v951_v1 }
  0x1b   : > { %650 = vmatprep.mubr.f32.mxu1 %v951_v1 }
  0x1d   : > { %874 = vmatmul.mubr.msk.f32.gmra.mrb[2].mxu0 %vm472_vm0, %v459_v24 }
  0x1e   : > { %876 = vmatmul.mubr.msk.f32.gmra.mrb[2].mxu1 %vm472_vm0, %v561_v25 }
  0x89   : > { %v465_v26 = vpop.permute.xlu0 %464  ;;  %v567_v27 = vpop.permute.xlu1 %566 }
  0x8d   : > { %v470_v36 = vpop.permute.xlu0 %469  ;;  %v572_v37 = vpop.permute.xlu1 %571 }
  0x91   : > { %v670_v57 = vpop.permute.xlu0 %669  ;;  %v675_v58 = vpop.permute.xlu1 %674 }
  0x96   : > { %v699_v16 = vpop.permute.xlu0 %698 }
  0x97   : > { %v704_v20 = vrot.slane %v699_v16, %v703_v12 }
  0xec   : > { %v545_v28 = vpop.f32.mrb[0].mxu0 }
  0xed   : > { %v646_v29 = vpop.f32.mrb[0].mxu1  ;;  %v546_v30 = vadd.f32 %v545_v28, %v465_v26  ;;  %v547_v32 = vpop.f32.mrb[1].mxu0 }
  0xee   : > { %v647_v31 = vadd.f32 %v646_v29, %v567_v27  ;;  %v648_v33 = vpop.f32.mrb[1].mxu1  ;;  %v548_v34 = vadd.f32 %v547_v32, %v465_v26 }
  0xef   : > { %v649_v35 = vadd.f32 %v648_v33, %v567_v27  ;;  %v556_v38 = vmul.f32 0.999995, %v546_v30 }
  0xf0   : > { %v657_v39 = vmul.f32 0.999995, %v647_v31  ;;  %v557_v40 = vmul.f32 0.999995, %v548_v34  ;;  %v551_v42 = vpop.f32.mrb[2].mxu0 }
  0xf1   : > { %v658_v41 = vmul.f32 0.999995, %v649_v35  ;;  %v652_v43 = vpop.f32.mrb[2].mxu1  ;;  %v552_v45 = vadd.f32 %v551_v42, %v470_v36  ;;  %v553_v47 = vpop.f32.mrb[3].mxu0 }
  0xf2   : > { %v661_v44 = vsub.f32 %v556_v38, %v657_v39  ;;  %v653_v46 = vadd.f32 %v652_v43, %v572_v37  ;;  %v654_v48 = vpop.f32.mrb[3].mxu1  ;;  %v554_v50 = vadd.f32 %v553_v47, %v470_v36  ;;  %v454_v36 = vld [vmem:[%s434_s25] sm:$0xff]  ;;  %v455_v39 = vld [vmem:[%s434_s25 + $0x8] sm:$0xff] }
  0xf3   : > { %v662_v49 = vsub.f32 %v557_v40, %v658_v41  ;;  %v655_v51 = vadd.f32 %v654_v48, %v572_v37  ;;  %v558_v52 = vmul.f32 0.999995, %v552_v45  ;;  %v456_v37 = vld [vmem:[%s434_s25 + $0x10] sm:$0xff]  ;;  %v457_v40 = vld [vmem:[%s434_s25 + $0x18] sm:$0xff] }
  0xf4   : > { %v659_v53 = vmul.f32 0.999995, %v653_v46  ;;  %v559_v54 = vmul.f32 0.999995, %v554_v50  ;;  %v677_v60 = vmul.f32 %v670_v57, %v661_v44 }
  0xf5   : > { %v660_v55 = vmul.f32 0.999995, %v655_v51  ;;  %v678_v62 = vmul.f32 %v670_v57, %v662_v49 }
  0xf6   : > { %v663_v56 = vsub.f32 %v558_v52, %v659_v53 }
  0xf7   : > { %v664_v59 = vsub.f32 %v559_v54, %v660_v55 }
  0xf8   : > { %v679_v61 = vmul.f32 %v675_v58, %v663_v56 }
  0xf9   : > { %v680_v63 = vmul.f32 %v675_v58, %v664_v59 }
  0xfa   : > { %v681_v1 = vadd.f32 %v679_v61, %v677_v60 }
  0xfb   : > { %v688_v2 = vadd.f32 %v680_v63, %v678_v62 }
  0xfc   : > { %v682_v3 = vrot.slane %v681_v1, 4 }
  0xfd   : > { %v689_v4 = vrot.slane %v688_v2, 4 }
  0xfe   : > { %v683_v6 = vadd.f32 %v682_v3, %v681_v1 }
  0xff   : > { %v690_v9 = vadd.f32 %v689_v4, %v688_v2 }
 0x100   : > { %v684_v10 = vrot.slane %v683_v6, 2 }
 0x101   : > { %v691_v11 = vrot.slane %v690_v9, 2 }
 0x102   : > { %v685_v14 = vadd.f32 %v684_v10, %v683_v6 }
 0x103   : > { %v692_v17 = vadd.f32 %v691_v11, %v690_v9 }
 0x104   : > { %v686_v18 = vrot.slane %v685_v14, 1 }
 0x105   : > { %v693_v19 = vrot.slane %v692_v17, 1 }
 0x106   : > { %v687_v21 = vadd.f32 %v686_v18, %v685_v14 }
 0x107   : > { %v694_v22 = vadd.f32 %v693_v19, %v692_v17 }
 0x108   : > { %v705_v23 = vadd.f32 %v704_v20, %v687_v21 }
 0x109   : > { %v706_v24 = vadd.f32 %v704_v20, %v694_v22 }
 0x10a   : > { %v707_v25 = vmul.f32 0.999995, %v705_v23 }
 0x10b   : > { %v708_v26 = vmul.f32 0.999995, %v706_v24 }
 0x10c   : > { %v709_v27 = vsub.f32 0.0, %v707_v25 }
 0x10d   : > { %v710_v28 = vsub.f32 0.0, %v708_v26 }
 0x10e   : > { %v711_v29 = vmul.f32 1.442695, %v709_v27 }
 0x10f   : > { %v713_v30 = vmul.f32 1.442695, %v710_v28 }
 0x110   : > { %919 = vpow2.f32 %v711_v29 }
 0x111   : > { %921 = vpow2.f32 %v713_v30 }
 0x11a   : > { %v920_v31 = vpop.eup %919 }
 0x11b   : > { %v922_v32 = vpop.eup %921  ;;  %v715_v33 = vadd.f32 1.0, %v920_v31 }
 0x11c   : > { %v716_v34 = vadd.f32 1.0, %v922_v32 }
 0x11d   : > { %923 = vrcp.f32 %v715_v33 }
 0x11e   : > { %925 = vrcp.f32 %v716_v34 }
 0x127   : > { %v924_v35 = vpop.eup %923 }
 0x128   : > { %v926_v38 = vpop.eup %925  ;;  %v723_v41 = vsub.f32 1.0, %v924_v35  ;;  %v719_v43 = vmul.f32 %v924_v35, %v1055_v13  ;;  %v721_v44 = vmul.f32 %v924_v35, %v1057_v15 }
 0x129   : > { %v724_v42 = vsub.f32 1.0, %v926_v38  ;;  %v720_v47 = vmul.f32 %v926_v38, %v1042_v7  ;;  %v722_v48 = vmul.f32 %v926_v38, %v1044_v8 }
 0x12a   : > { %v725_v45 = vmul.f32 %v723_v41, %v454_v36  ;;  %v727_v46 = vmul.f32 %v723_v41, %v456_v37 }
 0x12b   : > { %v726_v49 = vmul.f32 %v724_v42, %v455_v39  ;;  %v728_v50 = vmul.f32 %v724_v42, %v457_v40 }
 0x12c   : > { %v729_v51 = vadd.f32 %v725_v45, %v719_v43  ;;  %v731_v52 = vadd.f32 %v727_v46, %v721_v44 }
 0x12d   : > { %v730_v53 = vadd.f32 %v726_v49, %v720_v47  ;;  %v732_v54 = vadd.f32 %v728_v50, %v722_v48 }
 0x12e   : > { %733 = vst [vmem:[%s444_s28] sm:$0xff] %v729_v51  ;;  %735 = vst [vmem:[%s444_s28 + $0x10] sm:$0xff] %v731_v52 }
 0x12f   : > { %734 = vst [vmem:[%s444_s28 + $0x8] sm:$0xff] %v730_v53  ;;  %736 = vst [vmem:[%s444_s28 + $0x18] sm:$0xff] %v732_v54 }
 0x130 PF: > { %s21_s13 = sadd.s32 1, %s949_s13   ;;  %s1107_s11 = smov %s945_s12 }
 0x131   : > { %p18_p5 = scmp.ge.s32.totalorder %s21_s13, 4   ;;  %s1108_s12 = smov %s1110_s8 }
 0x133   :  { %20 = sbr.rel (!%p18_p5) target bundleno = 3 (0x3), region = 92 }

</bundles_post_ra>
